<compile_context>
chip_gen: v5e
topology: v5e:2x2
jax: 0.10.0
libtpu: 0.0.40
codegen_flags: <defaults>
</compile_context>

<pallas_src>
import math

import jax
import jax.numpy as jnp
from jax.experimental import pallas as pl
from jax.experimental.pallas import tpu as pltpu

LANES = 128
TILE_BYTES = 4 << 20          # ~4 MiB of input per grid step
VMEM_LIMIT_BYTES = 48 << 20   # covers double-buffered 4 MiB in + 4 MiB out tiles on all gens


def _ceil_to(a: int, m: int) -> int:
    return ((a + m - 1) // m) * m


def _ttsigmoid_math(x, a, out_dtype):
    """Elementwise  a*tanh(x/2) + a  ==  log2(w+offset) * sigmoid(x),  a = 0.5*log2(w+offset).

    Used both inside the Pallas kernel (on a VMEM tile) and in plain jnp (ragged tail).
    `a` is either a static Python float (baked constant) or a traced f32 scalar.
    """
    t = jnp.tanh(x.astype(jnp.float32) * 0.5)       # EUP tanh; no divide
    if jnp.dtype(out_dtype) == jnp.dtype(jnp.bfloat16) and isinstance(a, (int, float)):
        # Packed bf16 epilogue (post-tanh mul/add + downcast): keeps bf16 I/O HBM-bound
        # on v6e/v7x; ~neutral on v5e.  Only enabled for a compile-time constant scale.
        ab = jnp.bfloat16(a)
        return ab * t.astype(jnp.bfloat16) + ab
    return (a * t + a).astype(out_dtype)


def _prepare_scale(w, omega_offset, clamp_omega):
    """Return (static_a, dynamic_a); exactly one of them is not None.

    static_a : Python float when w is a plain Python number (baked into the kernel).
    dynamic_a: (1,) float32 array, delivered to the kernel via SMEM scalar prefetch.
    """
    if isinstance(w, (int, float)):
        wv = float(w)
        if clamp_omega:
            wv = min(max(wv, 0.0), 1.0)
        v = wv + float(omega_offset)
        if v > 0.0:
            a = 0.5 * math.log2(v)
        elif v == 0.0:
            a = float("-inf")
        else:
            a = float("nan")      # matches torch.log2 of a non-positive argument
        return a, None
    # TODO(synk): variable_omega with a per-channel/per-element w tensor would need a
    # broadcast second kernel input; only scalar (0-d / single-element) w is supported.
    wv = jnp.asarray(w, jnp.float32).reshape(-1)[:1]
    if clamp_omega:
        wv = jnp.clip(wv, 0.0, 1.0)
    return None, 0.5 * jnp.log2(wv + jnp.float32(omega_offset))


def ttsigmoid(x: jax.Array, w=1.0, *, omega_offset: float = 1.0,
              clamp_omega: bool = False) -> jax.Array:
    """TTsigmoid forward: log2(w + omega_offset) / (1 + exp(-x)), elementwise over x."""
    orig_shape = x.shape
    dtype = x.dtype
    static_a, dynamic_a = _prepare_scale(w, omega_offset, clamp_omega)
    a_jnp = static_a if static_a is not None else dynamic_a[0]

    xf = x.reshape(-1)
    n = xf.shape[0]
    rows, rem = divmod(n, LANES)

    if rows == 0:
        # Fewer than 128 elements: not worth a kernel launch.
        return _ttsigmoid_math(xf, a_jnp, dtype).reshape(orig_shape)

    # Lane-dense [rows, 128] view (free reshape when numel % 128 == 0).
    # TODO(synk): the ragged-numel path still pays ~2 extra HBM passes (prefix slice +
    # output concat); a fully copy-free version would need 1-D masked ragged blocks.
    n_main = rows * LANES
    x2d = (xf if rem == 0 else xf[:n_main]).reshape(rows, LANES)

    # Tile sizing: ~4 MiB of input per step, rows aligned to the packed sublane tile
    # (8 f32 / 16 bf16 / 32 one-byte dtypes).  Prefer >= 2 grid steps (v7x megacore);
    # if the whole array is smaller than one aligned tile, use the full row count
    # (allowed because a block dim equal to the array dim needs no alignment).
    itemsize = jnp.dtype(dtype).itemsize
    row_align = 8 * max(1, 4 // itemsize)
    max_tile_rows = max(row_align,
                        (TILE_BYTES // (LANES * itemsize)) // row_align * row_align)
    half_rows = _ceil_to(max(1, (rows + 1) // 2), row_align)
    row_tile = min(rows, min(max_tile_rows, half_rows))
    grid = (pl.cdiv(rows, row_tile),)

    common = dict(
        out_shape=jax.ShapeDtypeStruct((rows, LANES), dtype),
        compiler_params=pltpu.CompilerParams(
            dimension_semantics=("parallel",),
            vmem_limit_bytes=VMEM_LIMIT_BYTES,
        ),
    )

    if static_a is not None:
        # Scale baked in as a compile-time constant: no scalar operand at all.
        def kernel(x_ref, o_ref):
            o_ref[...] = _ttsigmoid_math(x_ref[...], static_a, dtype)

        out2d = pl.pallas_call(
            kernel,
            grid_spec=pltpu.PrefetchScalarGridSpec(
                num_scalar_prefetch=0,
                grid=grid,
                in_specs=[pl.BlockSpec((row_tile, LANES), lambda i: (i, 0))],
                out_specs=pl.BlockSpec((row_tile, LANES), lambda i: (i, 0)),
            ),
            **common,
        )(x2d)
    else:
        # Traced scalar w: deliver a = 0.5*log2(w+offset) once via SMEM scalar prefetch.
        def kernel(a_ref, x_ref, o_ref):
            o_ref[...] = _ttsigmoid_math(x_ref[...], a_ref[0], dtype)

        out2d = pl.pallas_call(
            kernel,
            grid_spec=pltpu.PrefetchScalarGridSpec(
                num_scalar_prefetch=1,
                grid=grid,
                in_specs=[pl.BlockSpec((row_tile, LANES), lambda i, a: (i, 0))],
                out_specs=pl.BlockSpec((row_tile, LANES), lambda i, a: (i, 0)),
            ),
            **common,
        )(dynamic_a, x2d)

    out = out2d.reshape(n_main)
    if rem:
        tail = _ttsigmoid_math(xf[n_main:], a_jnp, dtype)
        out = jnp.concatenate([out, tail])
    return out.reshape(orig_shape)


if __name__ == "__main__":
    key = jax.random.PRNGKey(0)
    omega_offset = 1.0

    # 1) f32, static w=1.0 (scale baked in as a compile-time constant).
    x = jax.random.normal(key, (2, 4, 16, 16), dtype=jnp.float32)
    out = ttsigmoid(x, 1.0, omega_offset=omega_offset)
    jax.block_until_ready(out)
    ref = jnp.log2(1.0 + omega_offset) / (1.0 + jnp.exp(-x))
    assert out.shape == x.shape and out.dtype == x.dtype
    assert jnp.max(jnp.abs(out - ref)) < 1e-5

    # 2) clamp_omega with static w=2.5 (clamped to 1.0).
    out2 = ttsigmoid(x, 2.5, omega_offset=omega_offset, clamp_omega=True)
    jax.block_until_ready(out2)
    ref2 = jnp.log2(1.0 + omega_offset) / (1.0 + jnp.exp(-x))
    assert jnp.max(jnp.abs(out2 - ref2)) < 1e-5

    # 3) traced scalar w -> SMEM scalar-prefetch path.
    w_arr = jnp.float32(0.3)
    out3 = ttsigmoid(x, w_arr, omega_offset=omega_offset)
    jax.block_until_ready(out3)
    ref3 = jnp.log2(w_arr + omega_offset) / (1.0 + jnp.exp(-x))
    assert jnp.max(jnp.abs(out3 - ref3)) < 1e-5

    # 4) ragged numel (2*5*13 = 130): kernel on the 128-aligned prefix + jnp tail,
    #    also exercises a block larger than the array in the sublane dim.
    x4 = jax.random.normal(jax.random.PRNGKey(1), (2, 5, 13), dtype=jnp.float32)
    out4 = ttsigmoid(x4, 1.0, omega_offset=omega_offset)
    jax.block_until_ready(out4)
    ref4 = jnp.log2(1.0 + omega_offset) / (1.0 + jnp.exp(-x4))
    assert out4.shape == x4.shape
    assert jnp.max(jnp.abs(out4 - ref4)) < 1e-5

    # 5) bf16 I/O (packed bf16 epilogue path).
    x5 = jax.random.normal(jax.random.PRNGKey(2), (4, 8, 128), dtype=jnp.bfloat16)
    out5 = ttsigmoid(x5, 1.0, omega_offset=omega_offset)
    jax.block_until_ready(out5)
    ref5 = (1.0 / (1.0 + jnp.exp(-x5.astype(jnp.float32)))).astype(jnp.bfloat16)
    assert out5.dtype == jnp.bfloat16
    assert jnp.max(jnp.abs(out5.astype(jnp.float32) - ref5.astype(jnp.float32))) < 3e-2

    print("KERNEL_OK")
</pallas_src>

<mosaic_0001>
module attributes {stable_mosaic.version = 11 : i64} {
  func.func @kernel(%arg0: i32, %arg1: memref<8x128xf32, #tpu.memory_space<vmem>>, %arg2: memref<8x128xf32, #tpu.memory_space<vmem>>) attributes {dimension_semantics = [#tpu.dimension_semantics<parallel>], iteration_bounds = array<i64: 2>, scalar_prefetch = 0 : i64, scratch_operands = 0 : i64, tpu.core_type = #tpu.core_type<tc>, window_params = [{transform_indices = @transform_0, window_bounds = array<i64: 8, 128>}, {transform_indices = @transform_1, window_bounds = array<i64: 8, 128>}]} {
    %c0 = arith.constant 0 : index
    %c0_0 = arith.constant 0 : index
    %0 = vector.load %arg1[%c0, %c0_0] : memref<8x128xf32, #tpu.memory_space<vmem>>, vector<8x128xf32>
    %cst = arith.constant 5.000000e-01 : f32
    %1 = vector.broadcast %cst : f32 to vector<8x128xf32>
    %2 = arith.mulf %0, %1 : vector<8x128xf32>
    %3 = math.tanh %2 : vector<8x128xf32>
    %cst_1 = arith.constant 5.000000e-01 : f32
    %4 = vector.broadcast %cst_1 : f32 to vector<8x128xf32>
    %5 = arith.mulf %4, %3 : vector<8x128xf32>
    %cst_2 = arith.constant 5.000000e-01 : f32
    %6 = vector.broadcast %cst_2 : f32 to vector<8x128xf32>
    %7 = arith.addf %5, %6 : vector<8x128xf32>
    %c0_3 = arith.constant 0 : index
    %c0_4 = arith.constant 0 : index
    %8 = vector.load %arg2[%c0_3, %c0_4] : memref<8x128xf32, #tpu.memory_space<vmem>>, vector<8x128xf32>
    tpu.vector_store %arg2[%c0_3, %c0_4], %7 {strides = array<i32>} : memref<8x128xf32, #tpu.memory_space<vmem>>, vector<8x128xf32>,
    return
  }
  func.func @transform_0(%arg0: i32) -> (i32, i32) {
    %c0_i32 = arith.constant 0 : i32
    %c0_i32_0 = arith.constant 0 : i32
    return %arg0, %c0_i32 : i32, i32
  }
  func.func @transform_1(%arg0: i32) -> (i32, i32) {
    %c0_i32 = arith.constant 0 : i32
    %c0_i32_0 = arith.constant 0 : i32
    return %arg0, %c0_i32 : i32, i32
  }
}

</mosaic_0001>

<bundles_post_ra>
// kernel: tpu_custom_call.1
= control target key start
LH: loop header
LB: loop body
LE: loop exit
PB: predicated region body
PF: predicated region fallthrough
CT: control target
= control target key end

     0   :  { %6 = vsyncpa [#allocation3], 0  ;;  %s521_s0 = inlined_call_operand.hbm [shape: f32[16,128], index: 0, kind: input, shape index: {}]   ;;  %s522_s1 = inlined_call_operand.hbm [shape: f32[16,128], index: 1, kind: output, shape index: {}]  }
   0x1   :  { %8 = vsyncpa [#allocation3 + $0x1], 0 }
   0x2   :  { %9 = vsyncpa [#allocation4], 0 }
   0x3   :  { %11 = vsyncpa [#allocation4 + $0x1], 0  ;;  %s394_s6 = smov 0   ;;  %s396_s7 = smov 0  }
   0x4   :  { %s398_s8 = smov 0   ;;  %s400_s9 = smov 0  }
   0x5 LB: > { %s415_s10 = sadd.s32 4294967295, %s382_s9   ;;  %s226_s11 = sadd.s32 4294967294, %s382_s9   ;;  %s382_s9 = sphi %s400_s9, %s532_s9   ;;  %s378_s8 = sphi %s398_s8, %s531_s8   ;;  %s374_s7 = sphi %s396_s7, %s530_s7   ;;  %s370_s6 = sphi %s394_s6, %s529_s6  }
   0x6   : > { %s419_s12 = sadd.s32 1, %s382_s9   ;;  %s24_s13 = sadd.s32 1, %s378_s8 }
   0x7   : > { %s21_s14 = ssub.s32 %s382_s9, %s419_s12  ;;  %p31_p0 = scmp.ne.s32.totalorder %s378_s8, %s374_s7 }
   0x8   : > { %p22_p1 = scmp.eq.s32.totalorder %s21_s14, 0  ;;  %p32_p2 = scmp.eq.s32.totalorder %s382_s9, 0 }
   0x9   : > { %p37_p3 = scmp.ne.s32.totalorder %s374_s7, %s370_s6  ;;  %p38_p4 = scmp.eq.s32.totalorder %s415_s10, 0 }
   0xa   : > { %s431_s15 = scalar_select %p22_p1, %s378_s8, %s24_s13  }
   0xb   : > { %p433_p5 = por %p32_p2, %p31_p0  ;;  %p437_p6 = por %p38_p4, %p37_p3 }
   0xc   : > { %p61_p7 = scmp.eq.s32.totalorder %s415_s10, 1  ;;  %p67_p8 = scmp.eq.s32.totalorder %s226_s11, 1 }
   0xd   : > { %p250_p10 = scmp.lt.s32.totalorder %s382_s9, 2  ;;  %s87_s20 = sand.u32 1, %s378_s8  }
   0xe   : > { %p444_p11 = por %p61_p7, %p31_p0  ;;  %p448_p12 = por %p67_p8, %p37_p3 }
   0xf   : > { %s230_s21 = sshll.u32 %s382_s9, 3  ;;  %s229_s22 = sshll.u32 %s87_s20, 3 }
  0x10   : > { %s95_s25 = scalar_lea.hbm %s521_s0, %s230_s21  ;;  %s91_s27 = scalar_lea.vmem [#allocation2], %s229_s22 }
  0x11   : > { %s97_s26 = sshll.u32 %s95_s25, 4  ;;  %s99_s28 = sshll.u32 %s91_s27, 4  ;;  %s98_s26 = int_to_ptr.hbm [resolvable:$true] %s97_s26  ;;  %s100_s28 = int_to_ptr.vmem [resolvable:$true] %s99_s28 }
  0x12   : > { %p459_p13 = pnand %p250_p10, %p433_p5  ;;  %p231_p0 = scmp.ge.s32.totalorder %s382_s9, 1 }
  0x13   : > { %p104_p1 = scmp.lt.s32.totalorder %s382_s9, 3  ;;  %s88_s30 = scalar_lea.sflag [#allocation3], %s87_s20 }
  0x14   : > { %s286_s2 = sshra.s32 %s98_s26, 4  ;;  %p290_p3 = pneg %p459_p13  ;;  %s287_s2 = int_to_ptr.hbm [resolvable:$true] %s286_s2 }
  0x15   : > { %s288_s3 = scalar_lea.hbm %s287_s2, 8  ;;  %s293_s11 = scalar_lea.hbm %s521_s0, 16 }
  0x16   : > { %p289_p2 = scmp.ne.s32.totalorder %s287_s2, %s288_s3  ;;  %p294_p5 = scmp.lt.s32.totalorder %s287_s2, %s521_s0 }
  0x17   : > { %p295_p8 = scmp.lt.s32.totalorder %s293_s11, %s288_s3 }
  0x18   : > { %p291_p4 = pnand %p290_p3, %p289_p2 }
  0x19   : > { %p296_p10 = por %p295_p8, %p294_p5 }
  0x1a   : > { %p292_p7 = pneg %p291_p4 }
  0x1c   : > { %p297_p9 = pnand %p296_p10, %p292_p7 }
  0x1e   : > { %300 = shalt.err (!%p297_p9)
}
  0x1f   : > { %245 = dma.hbm_to_vmem [thread:$0]  (!%p459_p13), %s98_s26, 128, %s100_s28, %s88_s30  }
  0x20   : > { %p105_p2 = pnand %p231_p0, %p104_p1 }
  0x21   : > { %s480_s16 = sand.u32 (!%p105_p2), 1, %s374_s7  }
  0x22   : > { %108 = sbr.rel (%p105_p2) target bundleno = 57 (0x39), region = 24  ;;  %s232_s20 = sshll.u32 (!%p105_p2), %s480_s16, 3 }
  0x23   : > { %s111_s21 = scalar_lea.sflag (!%p105_p2), [#allocation3], %s480_s16  ;;  %s114_s22 = scalar_lea.vmem (!%p105_p2), [#allocation2], %s232_s20 }
  0x27   : > { %361 = dma.done.wait (%p437_p6), %s111_s21, 128  }
  0x28   : > { %363 = vsyncadd (%p437_p6), %s111_s21, 4294967168  ;;  %v134_v0 = vld [vmem:[%s114_s22] sm:$0xff]  ;;  %s235_s23 = sshll.u32 %s415_s10, 3  ;;  %s133_s27 = scalar_lea.vmem [#allocation5], %s232_s20 }
  0x29   : > { %v135_v1 = vmul.f32 0.5, %v134_v0  ;;  %s151_s26 = scalar_lea.hbm %s522_s1, %s235_s23  ;;  %s153_s28 = sshll.u32 %s133_s27, 4  ;;  %s154_s28 = int_to_ptr.vmem [resolvable:$true] %s153_s28 }
  0x2a   : > { %s155_s29 = sshll.u32 %s151_s26, 4  ;;  %s141_s17 = scalar_lea.sflag [#allocation4], %s480_s16  ;;  %s156_s29 = int_to_ptr.hbm [resolvable:$true] %s155_s29 }
  0x2b   : > { %284 = vtanh.f32 %v135_v1  ;;  %s330_s30 = sshra.s32 %s156_s29, 4  ;;  %s336_s4 = scalar_lea.hbm %s522_s1, 16  ;;  %s331_s30 = int_to_ptr.hbm [resolvable:$true] %s330_s30 }
  0x2c   : > { %s332_s2 = scalar_lea.hbm %s331_s30, 8  ;;  %p337_p0 = scmp.lt.s32.totalorder %s331_s30, %s522_s1 }
  0x2d   : > { %p333_p6 = scmp.ne.s32.totalorder %s331_s30, %s332_s2  ;;  %p338_p1 = scmp.lt.s32.totalorder %s336_s4, %s332_s2 }
  0x2f   : > { %p334_p9 = pnand %p333_p6, %p444_p11  ;;  %p339_p3 = por %p338_p1, %p337_p0 }
  0x31   : > { %v285_v2 = vpop.eup %284  ;;  %p335_p13 = pneg %p334_p9 }
  0x32   : > { %v137_v3 = vmul.f32 0.5, %v285_v2 }
  0x33   : > { %p340_p4 = pnand %p339_p3, %p335_p13 }
  0x34   : > { %v138_v4 = vadd.f32 0.5, %v137_v3 }
  0x36   : > { %139 = vst [vmem:[%s133_s27] sm:$0xff] %v138_v4 }
  0x37   : > { %343 = shalt.err (!%p340_p4)
}
  0x38   : > { %240 = dma.vmem_to_hbm [thread:$0]  (%p444_p11), %s154_s28, 128, %s156_s29, %s141_s17  }
  0x39 PF: > { %s167_s13 = sand.u32 1, %s370_s6   ;;  %p528_p7 = scmp.ge.s32.totalorder %s382_s9, 2 }
  0x3a   : > { %s168_s14 = scalar_lea.sflag [#allocation4], %s167_s13 }
  0x3b   : > { %p247_p5 = pnand %p528_p7, %p448_p12 }
  0x3d   : > { %p248_p8 = pneg %p247_p5 }
  0x3f   : > { %365 = dma.done.wait (%p248_p8), %s168_s14, 128  }
  0x40   : > { %367 = vsyncadd (%p248_p8), %s168_s14, 4294967168  ;;  %p14_p10 = scmp.ge.s32.totalorder %s419_s12, 4   ;;  %s529_s6 = smov %s374_s7 }
  0x41   : > { %s530_s7 = smov %s378_s8  ;;  %s531_s8 = smov %s431_s15 }
  0x42   : > { %s532_s9 = smov %s419_s12  ;;  %16 = sbr.rel (!%p14_p10) target bundleno = 5 (0x5), region = 69 }
  0x47   :  { %174 = vsyncpa [#allocation3], 1 }
  0x48   :  { %176 = vsyncpa [#allocation3 + $0x1], 1 }
  0x49   :  { %177 = vsyncpa [#allocation4], 1 }
  0x4a   :  { %179 = vsyncpa [#allocation4 + $0x1], 1 }

</bundles_post_ra>
